<compile_context>
chip_gen: v6e
topology: v6e:2x2x1
jax: 0.10.0
libtpu: 0.0.40
codegen_flags: <defaults>
</compile_context>

<pallas_src>
import functools

import jax
import jax.numpy as jnp
from jax import lax
from jax.experimental import pallas as pl
from jax.experimental.pallas import tpu as pltpu


def _scaled_flux_and_wave(u, u2, u4, *, beta, s):
    """Return (s*f(u), s*|f'(u)|) with s = 0.5*dt/dx folded into the coefficients.

    f(u)  = 1.5u + (b/16)u^2 - (0.5 + b/6)u^3 + (b/8)u^4 - (b/48)u^6
    f'(u) = 1.5 + (b/8)u - (1.5 + b/2)u^2 + (b/2)u^3 - (b/8)u^5
    Evaluated Estrin-style sharing u^2 / u^4 so the independent sub-terms interleave on the VPU.
    """
    b = float(beta)
    # --- scaled flux coefficients ---
    f1 = s * 1.5
    f2 = s * (b / 16.0)
    f3 = -s * (0.5 + b / 6.0)
    f4 = s * (b / 8.0)
    f6 = -s * (b / 48.0)
    f_low = f1 * u + f2 * u2
    f_mid = f3 * u + f4 * u2
    f_high = f6 * u2
    sf = f_low + u2 * f_mid + u4 * f_high

    # --- scaled |derivative| coefficients ---
    d0 = s * 1.5
    d1 = s * (b / 8.0)
    d2 = -s * (1.5 + b / 2.0)
    d3 = s * (b / 2.0)
    d5 = -s * (b / 8.0)
    d_low = d0 + d1 * u
    d_mid = d2 + d3 * u
    d_high = d5 * u
    sa = jnp.abs(d_low + u2 * d_mid + u4 * d_high)   # valid since s > 0 (asserted in wrapper)
    return sf, sa


def _fv_step(u, is_left, is_right, *, n, beta, s):
    """One local Lax-Friedrichs finite-volume step, fully in registers (full lane width)."""
    u2 = u * u
    u4 = u2 * u2
    # Rolls that depend only on u issue on the XLU while the VPU evaluates the polynomials.
    u_r = pltpu.roll(u, shift=n - 1, axis=1)   # u_r[j] = u[j+1]
    u_l = pltpu.roll(u, shift=1, axis=1)       # u_l[j] = u[j-1]

    sf, sa = _scaled_flux_and_wave(u, u2, u4, beta=beta, s=s)
    sf_r = pltpu.roll(sf, shift=n - 1, axis=1)
    sa_r = pltpu.roll(sa, shift=n - 1, axis=1)

    # g[j] = (dt/dx) * f_half[j]  (interface j+1/2), valid for j = 0..n-2.
    # Lane n-1 is finite wraparound filler that is never selected into the result.
    g = (sf + sf_r) - jnp.maximum(sa, sa_r) * (u_r - u)

    # Boundary candidates are built from g (and u_l/u_r) directly, not by rolling u_cand,
    # so these XLU rolls overlap with the interior-update VPU math.
    g_l1 = pltpu.roll(g, shift=1, axis=1)       # g[j-1]
    g_r = pltpu.roll(g, shift=n - 1, axis=1)    # g[j+1]
    g_l2 = pltpu.roll(g, shift=2, axis=1)       # g[j-2]

    u_cand = u - (g - g_l1)               # interior lanes j = 1..n-2
    left_cand = u_r - (g_r - g)           # lane 0:    equals u_cand[1]   (u[0] = u[1])
    right_cand = u_l - (g_l1 - g_l2)      # lane n-1:  equals u_cand[n-2] (u[n-1] = u[n-2])

    return jnp.where(is_left, left_cand, jnp.where(is_right, right_cand, u_cand))


def _fvm_chunk_kernel(init_ref, traj_ref, u_scr, *, beta, s, n, chunk, unroll):
    """One grid step = `chunk` fused time steps; u_scr carries the state across chunk iterations."""
    i = pl.program_id(1)                 # chunk (time) axis; axis 0 is the batch-tile axis
    batch_t = u_scr.shape[0]

    # Hoisted, loop-invariant lane masks (broadcast_in_dim is not CSE'd; build once).
    lane = lax.broadcasted_iota(jnp.int32, (batch_t, n), 1)
    is_left = lane == 0
    is_right = lane == n - 1

    @pl.when(i == 0)
    def _():
        # trajectories[0, :, :] = init  (first row of the first chunk is the unstepped state)
        u_scr[...] = init_ref[...]

    @pl.when(i > 0)
    def _():
        # Cross-chunk carry: first row of this chunk = one step from the previous chunk's last row.
        u_scr[...] = _fv_step(u_scr[...], is_left, is_right, n=n, beta=beta, s=s)

    u = u_scr[...]
    traj_ref[0, :, :] = u

    if chunk <= 16:
        # Short chunks: full Python unroll, state stays entirely in registers.
        for t in range(1, chunk):
            u = _fv_step(u, is_left, is_right, n=n, beta=beta, s=s)
            traj_ref[t, :, :] = u
    else:
        # Long chunks: partially unrolled fori_loop keeps code size bounded; the steps are
        # serially dependent so full unroll buys the scheduler nothing.
        def body(t, u_c):
            u_n = _fv_step(u_c, is_left, is_right, n=n, beta=beta, s=s)
            traj_ref[t, :, :] = u_n
            return u_n

        u = lax.fori_loop(1, chunk, body, u, unroll=unroll)

    u_scr[...] = u


def _choose_chunk(stepnum, requested):
    """Largest divisor of stepnum that is <= requested, so padded_steps == stepnum."""
    requested = max(1, min(int(requested), int(stepnum)))
    for c in range(requested, 0, -1):
        if stepnum % c == 0:
            return c
    return 1


def variant_coe_linear1d_forward(init, stepnum, *, dt, dx, beta,
                                 steps_per_block=64, batch_tile=None):
    """Pallas equivalent of VariantCoeLinear1d.forward(init, stepnum) (f_real / is_real path)."""
    batch, n = init.shape
    stepnum = int(stepnum)
    r = float(dt) / float(dx)
    assert r > 0.0, "dt/dx must be positive (required to fold r into the wave-speed max)"

    chunk = _choose_chunk(stepnum, steps_per_block)
    num_chunks = stepnum // chunk

    # Optional leading "parallel" batch-tile axis (v7x megacore). Only used when it tiles cleanly
    # into (8,128)-aligned blocks; otherwise the whole batch stays in one block.
    if batch_tile is None:
        batch_tile = batch
    if batch_tile <= 0 or batch_tile > batch or batch % batch_tile != 0 or batch_tile % 8 != 0:
        batch_tile = batch
    num_batch_tiles = batch // batch_tile

    kernel = functools.partial(
        _fvm_chunk_kernel,
        beta=float(beta),
        s=0.5 * r,          # 0.5 (LxF) and dt/dx folded into the polynomial coefficients
        n=n,
        chunk=chunk,
        unroll=8,
    )
    traj = pl.pallas_call(
        kernel,
        out_shape=jax.ShapeDtypeStruct((stepnum, batch, n), init.dtype),
        grid_spec=pltpu.PrefetchScalarGridSpec(
            num_scalar_prefetch=0,
            grid=(num_batch_tiles, num_chunks),
            in_specs=[pl.BlockSpec((batch_tile, n), lambda b, i: (b, 0))],
            out_specs=pl.BlockSpec((chunk, batch_tile, n), lambda b, i: (i, b, 0)),
            scratch_shapes=[
                pltpu.VMEM((batch_tile, n), init.dtype),   # carried state across chunks
            ],
        ),
        compiler_params=pltpu.CompilerParams(
            # batch tiles are independent ("parallel"); time chunks are sequential ("arbitrary")
            dimension_semantics=("parallel", "arbitrary"),
        ),
    )(init)
    return traj


def _reference_forward(init, stepnum, *, dt, dx, beta):
    """Pure-JAX reference mirroring the PyTorch forward (f_real path, unfolded constants)."""
    r = float(dt) / float(dx)
    beta = float(beta)

    def flux(u):
        return 0.5 * u * (3.0 - u ** 2) + (beta / 12.0) * u ** 2 * (
            0.75 - 2.0 * u + 1.5 * u ** 2 - 0.25 * u ** 4)

    def dflux(u):
        return 1.5 * (1.0 - u ** 2) + (beta / 8.0) * u * (
            1.0 - 4.0 * u + 4.0 * u ** 2 - u ** 4)

    def step(u, _):
        f = flux(u)
        a = jnp.abs(dflux(u))
        amax = jnp.maximum(a[:, :-1], a[:, 1:])
        fh = 0.5 * (f[:, :-1] + f[:, 1:]) - 0.5 * amax * (u[:, 1:] - u[:, :-1])
        interior = u[:, 1:-1] - r * (fh[:, 1:] - fh[:, :-1])
        u_new = jnp.concatenate([interior[:, :1], interior, interior[:, -1:]], axis=1)
        return u_new, u_new

    _, traj = lax.scan(step, init, None, length=stepnum - 1)
    return jnp.concatenate([init[None], traj], axis=0)


if __name__ == "__main__":
    key = jax.random.PRNGKey(0)
    batch, n = 8, 128                      # batch_size=8, N=128 spatial cells
    beta = 0.1
    dx = 10.0 / n
    dt = 0.4 * dx                          # stable CFL-ish step (dt/dx = 0.4)

    init = jax.random.uniform(key, (batch, n), dtype=jnp.float32)

    # (1) Fully fused: all 8 time steps in a single grid iteration, state in registers.
    stepnum = 8
    ref = _reference_forward(init, stepnum, dt=dt, dx=dx, beta=beta)
    traj = variant_coe_linear1d_forward(
        init, stepnum, dt=dt, dx=dx, beta=beta, steps_per_block=stepnum
    )
    traj = jax.block_until_ready(traj)
    assert traj.shape == (stepnum, batch, n)
    assert bool(jnp.allclose(traj, ref, rtol=1e-4, atol=1e-4)), (
        float(jnp.max(jnp.abs(traj - ref)))
    )

    # (2) Chunked: 2 chunks of 4 steps, exercising the cross-chunk carry (i > 0) path.
    traj_chunked = variant_coe_linear1d_forward(
        init, stepnum, dt=dt, dx=dx, beta=beta, steps_per_block=4
    )
    traj_chunked = jax.block_until_ready(traj_chunked)
    assert bool(jnp.allclose(traj_chunked, ref, rtol=1e-4, atol=1e-4)), (
        float(jnp.max(jnp.abs(traj_chunked - ref)))
    )

    # (3) Long chunk: exercises the lax.fori_loop(unroll=8) inner time loop (chunk > 16).
    stepnum_long = 64
    ref_long = _reference_forward(init, stepnum_long, dt=dt, dx=dx, beta=beta)
    traj_long = variant_coe_linear1d_forward(
        init, stepnum_long, dt=dt, dx=dx, beta=beta, steps_per_block=64
    )
    traj_long = jax.block_until_ready(traj_long)
    assert bool(jnp.allclose(traj_long, ref_long, rtol=1e-3, atol=1e-3)), (
        float(jnp.max(jnp.abs(traj_long - ref_long)))
    )

    # (4) Batch-tiled: exercises the leading "parallel" batch-tile grid axis (v7x megacore path).
    init16 = jax.random.uniform(jax.random.fold_in(key, 1), (16, n), dtype=jnp.float32)
    ref16 = _reference_forward(init16, stepnum, dt=dt, dx=dx, beta=beta)
    traj16 = variant_coe_linear1d_forward(
        init16, stepnum, dt=dt, dx=dx, beta=beta, steps_per_block=4, batch_tile=8
    )
    traj16 = jax.block_until_ready(traj16)
    assert bool(jnp.allclose(traj16, ref16, rtol=1e-4, atol=1e-4)), (
        float(jnp.max(jnp.abs(traj16 - ref16)))
    )

    print("KERNEL_OK")
</pallas_src>

<mosaic_0001>
module attributes {stable_mosaic.version = 11 : i64} {
  func.func @_fvm_chunk_kernel(%arg0: i32, %arg1: i32, %arg2: memref<8x128xf32, #tpu.memory_space<vmem>>, %arg3: memref<8x8x128xf32, #tpu.memory_space<vmem>>, %arg4: memref<8x128xf32, #tpu.memory_space<vmem>>) attributes {dimension_semantics = [#tpu.dimension_semantics<parallel>, #tpu.dimension_semantics<arbitrary>], iteration_bounds = array<i64: 1, 1>, scalar_prefetch = 0 : i64, scratch_operands = 1 : i64, tpu.core_type = #tpu.core_type<tc>, window_params = [{transform_indices = @transform_0, window_bounds = array<i64: 8, 128>}, {transform_indices = @transform_1, window_bounds = array<i64: 8, 8, 128>}]} {
    %0 = tpu.iota {dimensions = array<i32: 1>} : vector<8x128xi32>
    %c0_i32 = arith.constant 0 : i32
    %1 = vector.broadcast %c0_i32 : i32 to vector<8x128xi32>
    %2 = arith.cmpi eq, %0, %1 : vector<8x128xi32>
    %c127_i32 = arith.constant 127 : i32
    %3 = vector.broadcast %c127_i32 : i32 to vector<8x128xi32>
    %4 = arith.cmpi eq, %0, %3 : vector<8x128xi32>
    %c0_i32_0 = arith.constant 0 : i32
    %5 = arith.cmpi eq, %arg1, %c0_i32_0 : i32
    %6 = arith.extui %5 : i1 to i32
    %c0_i32_1 = arith.constant 0 : i32
    %7 = arith.cmpi ne, %6, %c0_i32_1 : i32
    scf.if %7 {
      %c0_140 = arith.constant 0 : index
      %c0_141 = arith.constant 0 : index
      %408 = vector.load %arg2[%c0_140, %c0_141] : memref<8x128xf32, #tpu.memory_space<vmem>>, vector<8x128xf32>
      %c0_142 = arith.constant 0 : index
      %c0_143 = arith.constant 0 : index
      %409 = vector.load %arg4[%c0_142, %c0_143] : memref<8x128xf32, #tpu.memory_space<vmem>>, vector<8x128xf32>
      tpu.vector_store %arg4[%c0_142, %c0_143], %408 {strides = array<i32>} : memref<8x128xf32, #tpu.memory_space<vmem>>, vector<8x128xf32>,
    } else {
    }
    %c0_i32_2 = arith.constant 0 : i32
    %8 = arith.cmpi sgt, %arg1, %c0_i32_2 : i32
    %9 = arith.extui %8 : i1 to i32
    %c0_i32_3 = arith.constant 0 : i32
    %10 = arith.cmpi ne, %9, %c0_i32_3 : i32
    scf.if %10 {
      %c0_140 = arith.constant 0 : index
      %c0_141 = arith.constant 0 : index
      %408 = vector.load %arg4[%c0_140, %c0_141] : memref<8x128xf32, #tpu.memory_space<vmem>>, vector<8x128xf32>
      %409 = arith.mulf %408, %408 : vector<8x128xf32>
      %410 = arith.mulf %409, %409 : vector<8x128xf32>
      %c127_i32_142 = arith.constant 127 : i32
      %411 = tpu.dynamic_rotate %408 by %c127_i32_142 dim 1 : vector<8x128xf32>, i32 -> vector<8x128xf32>
      %c1_i32_143 = arith.constant 1 : i32
      %412 = tpu.dynamic_rotate %408 by %c1_i32_143 dim 1 : vector<8x128xf32>, i32 -> vector<8x128xf32>
      %cst_144 = arith.constant 3.000000e-01 : f32
      %413 = vector.broadcast %cst_144 : f32 to vector<8x128xf32>
      %414 = arith.mulf %413, %408 : vector<8x128xf32>
      %cst_145 = arith.constant 1.250000e-03 : f32
      %415 = vector.broadcast %cst_145 : f32 to vector<8x128xf32>
      %416 = arith.mulf %415, %409 : vector<8x128xf32>
      %417 = arith.addf %414, %416 : vector<8x128xf32>
      %cst_146 = arith.constant -0.103333332 : f32
      %418 = vector.broadcast %cst_146 : f32 to vector<8x128xf32>
      %419 = arith.mulf %418, %408 : vector<8x128xf32>
      %cst_147 = arith.constant 2.500000e-03 : f32
      %420 = vector.broadcast %cst_147 : f32 to vector<8x128xf32>
      %421 = arith.mulf %420, %409 : vector<8x128xf32>
      %422 = arith.addf %419, %421 : vector<8x128xf32>
      %cst_148 = arith.constant -4.16666677E-4 : f32
      %423 = vector.broadcast %cst_148 : f32 to vector<8x128xf32>
      %424 = arith.mulf %423, %409 : vector<8x128xf32>
      %425 = arith.mulf %409, %422 : vector<8x128xf32>
      %426 = arith.addf %417, %425 : vector<8x128xf32>
      %427 = arith.mulf %410, %424 : vector<8x128xf32>
      %428 = arith.addf %426, %427 : vector<8x128xf32>
      %cst_149 = arith.constant 2.500000e-03 : f32
      %429 = vector.broadcast %cst_149 : f32 to vector<8x128xf32>
      %430 = arith.mulf %429, %408 : vector<8x128xf32>
      %cst_150 = arith.constant 3.000000e-01 : f32
      %431 = vector.broadcast %cst_150 : f32 to vector<8x128xf32>
      %432 = arith.addf %431, %430 : vector<8x128xf32>
      %cst_151 = arith.constant 0.00999999977 : f32
      %433 = vector.broadcast %cst_151 : f32 to vector<8x128xf32>
      %434 = arith.mulf %433, %408 : vector<8x128xf32>
      %cst_152 = arith.constant -3.100000e-01 : f32
      %435 = vector.broadcast %cst_152 : f32 to vector<8x128xf32>
      %436 = arith.addf %435, %434 : vector<8x128xf32>
      %cst_153 = arith.constant -2.500000e-03 : f32
      %437 = vector.broadcast %cst_153 : f32 to vector<8x128xf32>
      %438 = arith.mulf %437, %408 : vector<8x128xf32>
      %439 = arith.mulf %409, %436 : vector<8x128xf32>
      %440 = arith.addf %432, %439 : vector<8x128xf32>
      %441 = arith.mulf %410, %438 : vector<8x128xf32>
      %442 = arith.addf %440, %441 : vector<8x128xf32>
      %443 = math.absf %442 : vector<8x128xf32>
      %c127_i32_154 = arith.constant 127 : i32
      %444 = tpu.dynamic_rotate %428 by %c127_i32_154 dim 1 : vector<8x128xf32>, i32 -> vector<8x128xf32>
      %c127_i32_155 = arith.constant 127 : i32
      %445 = tpu.dynamic_rotate %443 by %c127_i32_155 dim 1 : vector<8x128xf32>, i32 -> vector<8x128xf32>
      %446 = arith.addf %428, %444 : vector<8x128xf32>
      %447 = arith.maximumf %443, %445 : vector<8x128xf32>
      %448 = arith.subf %411, %408 : vector<8x128xf32>
      %449 = arith.mulf %447, %448 : vector<8x128xf32>
      %450 = arith.subf %446, %449 : vector<8x128xf32>
      %c1_i32_156 = arith.constant 1 : i32
      %451 = tpu.dynamic_rotate %450 by %c1_i32_156 dim 1 : vector<8x128xf32>, i32 -> vector<8x128xf32>
      %c127_i32_157 = arith.constant 127 : i32
      %452 = tpu.dynamic_rotate %450 by %c127_i32_157 dim 1 : vector<8x128xf32>, i32 -> vector<8x128xf32>
      %c2_i32_158 = arith.constant 2 : i32
      %453 = tpu.dynamic_rotate %450 by %c2_i32_158 dim 1 : vector<8x128xf32>, i32 -> vector<8x128xf32>
      %454 = arith.subf %450, %451 : vector<8x128xf32>
      %455 = arith.subf %408, %454 : vector<8x128xf32>
      %456 = arith.subf %452, %450 : vector<8x128xf32>
      %457 = arith.subf %411, %456 : vector<8x128xf32>
      %458 = arith.subf %451, %453 : vector<8x128xf32>
      %459 = arith.subf %412, %458 : vector<8x128xf32>
      %460 = arith.select %4, %459, %455 : vector<8x128xi1>, vector<8x128xf32>
      %461 = arith.select %2, %457, %460 : vector<8x128xi1>, vector<8x128xf32>
      %c0_159 = arith.constant 0 : index
      %c0_160 = arith.constant 0 : index
      %462 = vector.load %arg4[%c0_159, %c0_160] : memref<8x128xf32, #tpu.memory_space<vmem>>, vector<8x128xf32>
      tpu.vector_store %arg4[%c0_159, %c0_160], %461 {strides = array<i32>} : memref<8x128xf32, #tpu.memory_space<vmem>>, vector<8x128xf32>,
    } else {
    }
    %c0 = arith.constant 0 : index
    %c0_4 = arith.constant 0 : index
    %11 = vector.load %arg4[%c0, %c0_4] : memref<8x128xf32, #tpu.memory_space<vmem>>, vector<8x128xf32>
    %c0_5 = arith.constant 0 : index
    %c0_6 = arith.constant 0 : index
    %c0_7 = arith.constant 0 : index
    %12 = vector.load %arg3[%c0_5, %c0_6, %c0_7] : memref<8x8x128xf32, #tpu.memory_space<vmem>>, vector<1x8x128xf32>
    %13 = vector.shape_cast %12 : vector<1x8x128xf32> to vector<8x128xf32>
    %14 = vector.shape_cast %11 : vector<8x128xf32> to vector<1x8x128xf32>
    tpu.vector_store %arg3[%c0_5, %c0_6, %c0_7], %14 {strides = array<i32>} : memref<8x8x128xf32, #tpu.memory_space<vmem>>, vector<1x8x128xf32>,
    %15 = arith.mulf %11, %11 : vector<8x128xf32>
    %16 = arith.mulf %15, %15 : vector<8x128xf32>
    %c127_i32_8 = arith.constant 127 : i32
    %17 = tpu.dynamic_rotate %11 by %c127_i32_8 dim 1 : vector<8x128xf32>, i32 -> vector<8x128xf32>
    %c1_i32 = arith.constant 1 : i32
    %18 = tpu.dynamic_rotate %11 by %c1_i32 dim 1 : vector<8x128xf32>, i32 -> vector<8x128xf32>
    %cst = arith.constant 3.000000e-01 : f32
    %19 = vector.broadcast %cst : f32 to vector<8x128xf32>
    %20 = arith.mulf %19, %11 : vector<8x128xf32>
    %cst_9 = arith.constant 1.250000e-03 : f32
    %21 = vector.broadcast %cst_9 : f32 to vector<8x128xf32>
    %22 = arith.mulf %21, %15 : vector<8x128xf32>
    %23 = arith.addf %20, %22 : vector<8x128xf32>
    %cst_10 = arith.constant -0.103333332 : f32
    %24 = vector.broadcast %cst_10 : f32 to vector<8x128xf32>
    %25 = arith.mulf %24, %11 : vector<8x128xf32>
    %cst_11 = arith.constant 2.500000e-03 : f32
    %26 = vector.broadcast %cst_11 : f32 to vector<8x128xf32>
    %27 = arith.mulf %26, %15 : vector<8x128xf32>
    %28 = arith.addf %25, %27 : vector<8x128xf32>
    %cst_12 = arith.constant -4.16666677E-4 : f32
    %29 = vector.broadcast %cst_12 : f32 to vector<8x128xf32>
    %30 = arith.mulf %29, %15 : vector<8x128xf32>
    %31 = arith.mulf %15, %28 : vector<8x128xf32>
    %32 = arith.addf %23, %31 : vector<8x128xf32>
    %33 = arith.mulf %16, %30 : vector<8x128xf32>
    %34 = arith.addf %32, %33 : vector<8x128xf32>
    %cst_13 = arith.constant 2.500000e-03 : f32
    %35 = vector.broadcast %cst_13 : f32 to vector<8x128xf32>
    %36 = arith.mulf %35, %11 : vector<8x128xf32>
    %cst_14 = arith.constant 3.000000e-01 : f32
    %37 = vector.broadcast %cst_14 : f32 to vector<8x128xf32>
    %38 = arith.addf %37, %36 : vector<8x128xf32>
    %cst_15 = arith.constant 0.00999999977 : f32
    %39 = vector.broadcast %cst_15 : f32 to vector<8x128xf32>
    %40 = arith.mulf %39, %11 : vector<8x128xf32>
    %cst_16 = arith.constant -3.100000e-01 : f32
    %41 = vector.broadcast %cst_16 : f32 to vector<8x128xf32>
    %42 = arith.addf %41, %40 : vector<8x128xf32>
    %cst_17 = arith.constant -2.500000e-03 : f32
    %43 = vector.broadcast %cst_17 : f32 to vector<8x128xf32>
    %44 = arith.mulf %43, %11 : vector<8x128xf32>
    %45 = arith.mulf %15, %42 : vector<8x128xf32>
    %46 = arith.addf %38, %45 : vector<8x128xf32>
    %47 = arith.mulf %16, %44 : vector<8x128xf32>
    %48 = arith.addf %46, %47 : vector<8x128xf32>
    %49 = math.absf %48 : vector<8x128xf32>
    %c127_i32_18 = arith.constant 127 : i32
    %50 = tpu.dynamic_rotate %34 by %c127_i32_18 dim 1 : vector<8x128xf32>, i32 -> vector<8x128xf32>
    %c127_i32_19 = arith.constant 127 : i32
    %51 = tpu.dynamic_rotate %49 by %c127_i32_19 dim 1 : vector<8x128xf32>, i32 -> vector<8x128xf32>
    %52 = arith.addf %34, %50 : vector<8x128xf32>
    %53 = arith.maximumf %49, %51 : vector<8x128xf32>
    %54 = arith.subf %17, %11 : vector<8x128xf32>
    %55 = arith.mulf %53, %54 : vector<8x128xf32>
    %56 = arith.subf %52, %55 : vector<8x128xf32>
    %c1_i32_20 = arith.constant 1 : i32
    %57 = tpu.dynamic_rotate %56 by %c1_i32_20 dim 1 : vector<8x128xf32>, i32 -> vector<8x128xf32>
    %c127_i32_21 = arith.constant 127 : i32
    %58 = tpu.dynamic_rotate %56 by %c127_i32_21 dim 1 : vector<8x128xf32>, i32 -> vector<8x128xf32>
    %c2_i32 = arith.constant 2 : i32
    %59 = tpu.dynamic_rotate %56 by %c2_i32 dim 1 : vector<8x128xf32>, i32 -> vector<8x128xf32>
    %60 = arith.subf %56, %57 : vector<8x128xf32>
    %61 = arith.subf %11, %60 : vector<8x128xf32>
    %62 = arith.subf %58, %56 : vector<8x128xf32>
    %63 = arith.subf %17, %62 : vector<8x128xf32>
    %64 = arith.subf %57, %59 : vector<8x128xf32>
    %65 = arith.subf %18, %64 : vector<8x128xf32>
    %66 = arith.select %4, %65, %61 : vector<8x128xi1>, vector<8x128xf32>
    %67 = arith.select %2, %63, %66 : vector<8x128xi1>, vector<8x128xf32>
    %c1 = arith.constant 1 : index
    %c0_22 = arith.constant 0 : index
    %c0_23 = arith.constant 0 : index
    %68 = vector.load %arg3[%c1, %c0_22, %c0_23] : memref<8x8x128xf32, #tpu.memory_space<vmem>>, vector<1x8x128xf32>
    %69 = vector.shape_cast %68 : vector<1x8x128xf32> to vector<8x128xf32>
    %70 = vector.shape_cast %67 : vector<8x128xf32> to vector<1x8x128xf32>
    tpu.vector_store %arg3[%c1, %c0_22, %c0_23], %70 {strides = array<i32>} : memref<8x8x128xf32, #tpu.memory_space<vmem>>, vector<1x8x128xf32>,
    %71 = arith.mulf %67, %67 : vector<8x128xf32>
    %72 = arith.mulf %71, %71 : vector<8x128xf32>
    %c127_i32_24 = arith.constant 127 : i32
    %73 = tpu.dynamic_rotate %67 by %c127_i32_24 dim 1 : vector<8x128xf32>, i32 -> vector<8x128xf32>
    %c1_i32_25 = arith.constant 1 : i32
    %74 = tpu.dynamic_rotate %67 by %c1_i32_25 dim 1 : vector<8x128xf32>, i32 -> vector<8x128xf32>
    %cst_26 = arith.constant 3.000000e-01 : f32
    %75 = vector.broadcast %cst_26 : f32 to vector<8x128xf32>
    %76 = arith.mulf %75, %67 : vector<8x128xf32>
    %cst_27 = arith.constant 1.250000e-03 : f32
    %77 = vector.broadcast %cst_27 : f32 to vector<8x128xf32>
    %78 = arith.mulf %77, %71 : vector<8x128xf32>
    %79 = arith.addf %76, %78 : vector<8x128xf32>
    %cst_28 = arith.constant -0.103333332 : f32
    %80 = vector.broadcast %cst_28 : f32 to vector<8x128xf32>
    %81 = arith.mulf %80, %67 : vector<8x128xf32>
    %cst_29 = arith.constant 2.500000e-03 : f32
    %82 = vector.broadcast %cst_29 : f32 to vector<8x128xf32>
    %83 = arith.mulf %82, %71 : vector<8x128xf32>
    %84 = arith.addf %81, %83 : vector<8x128xf32>
    %cst_30 = arith.constant -4.16666677E-4 : f32
    %85 = vector.broadcast %cst_30 : f32 to vector<8x128xf32>
    %86 = arith.mulf %85, %71 : vector<8x128xf32>
    %87 = arith.mulf %71, %84 : vector<8x128xf32>
    %88 = arith.addf %79, %87 : vector<8x128xf32>
    %89 = arith.mulf %72, %86 : vector<8x128xf32>
    %90 = arith.addf %88, %89 : vector<8x128xf32>
    %cst_31 = arith.constant 2.500000e-03 : f32
    %91 = vector.broadcast %cst_31 : f32 to vector<8x128xf32>
    %92 = arith.mulf %91, %67 : vector<8x128xf32>
    %cst_32 = arith.constant 3.000000e-01 : f32
    %93 = vector.broadcast %cst_32 : f32 to vector<8x128xf32>
    %94 = arith.addf %93, %92 : vector<8x128xf32>
    %cst_33 = arith.constant 0.00999999977 : f32
    %95 = vector.broadcast %cst_33 : f32 to vector<8x128xf32>
    %96 = arith.mulf %95, %67 : vector<8x128xf32>
    %cst_34 = arith.constant -3.100000e-01 : f32
    %97 = vector.broadcast %cst_34 : f32 to vector<8x128xf32>
    %98 = arith.addf %97, %96 : vector<8x128xf32>
    %cst_35 = arith.constant -2.500000e-03 : f32
    %99 = vector.broadcast %cst_35 : f32 to vector<8x128xf32>
    %100 = arith.mulf %99, %67 : vector<8x128xf32>
    %101 = arith.mulf %71, %98 : vector<8x128xf32>
    %102 = arith.addf %94, %101 : vector<8x128xf32>
    %103 = arith.mulf %72, %100 : vector<8x128xf32>
    %104 = arith.addf %102, %103 : vector<8x128xf32>
    %105 = math.absf %104 : vector<8x128xf32>
    %c127_i32_36 = arith.constant 127 : i32
    %106 = tpu.dynamic_rotate %90 by %c127_i32_36 dim 1 : vector<8x128xf32>, i32 -> vector<8x128xf32>
    %c127_i32_37 = arith.constant 127 : i32
    %107 = tpu.dynamic_rotate %105 by %c127_i32_37 dim 1 : vector<8x128xf32>, i32 -> vector<8x128xf32>
    %108 = arith.addf %90, %106 : vector<8x128xf32>
    %109 = arith.maximumf %105, %107 : vector<8x128xf32>
    %110 = arith.subf %73, %67 : vector<8x128xf32>
    %111 = arith.mulf %109, %110 : vector<8x128xf32>
    %112 = arith.subf %108, %111 : vector<8x128xf32>
    %c1_i32_38 = arith.constant 1 : i32
    %113 = tpu.dynamic_rotate %112 by %c1_i32_38 dim 1 : vector<8x128xf32>, i32 -> vector<8x128xf32>
    %c127_i32_39 = arith.constant 127 : i32
    %114 = tpu.dynamic_rotate %112 by %c127_i32_39 dim 1 : vector<8x128xf32>, i32 -> vector<8x128xf32>
    %c2_i32_40 = arith.constant 2 : i32
    %115 = tpu.dynamic_rotate %112 by %c2_i32_40 dim 1 : vector<8x128xf32>, i32 -> vector<8x128xf32>
    %116 = arith.subf %112, %113 : vector<8x128xf32>
    %117 = arith.subf %67, %116 : vector<8x128xf32>
    %118 = arith.subf %114, %112 : vector<8x128xf32>
    %119 = arith.subf %73, %118 : vector<8x128xf32>
    %120 = arith.subf %113, %115 : vector<8x128xf32>
    %121 = arith.subf %74, %120 : vector<8x128xf32>
    %122 = arith.select %4, %121, %117 : vector<8x128xi1>, vector<8x128xf32>
    %123 = arith.select %2, %119, %122 : vector<8x128xi1>, vector<8x128xf32>
    %c2 = arith.constant 2 : index
    %c0_41 = arith.constant 0 : index
    %c0_42 = arith.constant 0 : index
    %124 = vector.load %arg3[%c2, %c0_41, %c0_42] : memref<8x8x128xf32, #tpu.memory_space<vmem>>, vector<1x8x128xf32>
    %125 = vector.shape_cast %124 : vector<1x8x128xf32> to vector<8x128xf32>
    %126 = vector.shape_cast %123 : vector<8x128xf32> to vector<1x8x128xf32>
    tpu.vector_store %arg3[%c2, %c0_41, %c0_42], %126 {strides = array<i32>} : memref<8x8x128xf32, #tpu.memory_space<vmem>>, vector<1x8x128xf32>,
    %127 = arith.mulf %123, %123 : vector<8x128xf32>
    %128 = arith.mulf %127, %127 : vector<8x128xf32>
    %c127_i32_43 = arith.constant 127 : i32
    %129 = tpu.dynamic_rotate %123 by %c127_i32_43 dim 1 : vector<8x128xf32>, i32 -> vector<8x128xf32>
    %c1_i32_44 = arith.constant 1 : i32
    %130 = tpu.dynamic_rotate %123 by %c1_i32_44 dim 1 : vector<8x128xf32>, i32 -> vector<8x128xf32>
    %cst_45 = arith.constant 3.000000e-01 : f32
    %131 = vector.broadcast %cst_45 : f32 to vector<8x128xf32>
    %132 = arith.mulf %131, %123 : vector<8x128xf32>
    %cst_46 = arith.constant 1.250000e-03 : f32
    %133 = vector.broadcast %cst_46 : f32 to vector<8x128xf32>
    %134 = arith.mulf %133, %127 : vector<8x128xf32>
    %135 = arith.addf %132, %134 : vector<8x128xf32>
    %cst_47 = arith.constant -0.103333332 : f32
    %136 = vector.broadcast %cst_47 : f32 to vector<8x128xf32>
    %137 = arith.mulf %136, %123 : vector<8x128xf32>
    %cst_48 = arith.constant 2.500000e-03 : f32
    %138 = vector.broadcast %cst_48 : f32 to vector<8x128xf32>
    %139 = arith.mulf %138, %127 : vector<8x128xf32>
    %140 = arith.addf %137, %139 : vector<8x128xf32>
    %cst_49 = arith.constant -4.16666677E-4 : f32
    %141 = vector.broadcast %cst_49 : f32 to vector<8x128xf32>
    %142 = arith.mulf %141, %127 : vector<8x128xf32>
    %143 = arith.mulf %127, %140 : vector<8x128xf32>
    %144 = arith.addf %135, %143 : vector<8x128xf32>
    %145 = arith.mulf %128, %142 : vector<8x128xf32>
    %146 = arith.addf %144, %145 : vector<8x128xf32>
    %cst_50 = arith.constant 2.500000e-03 : f32
    %147 = vector.broadcast %cst_50 : f32 to vector<8x128xf32>
    %148 = arith.mulf %147, %123 : vector<8x128xf32>
    %cst_51 = arith.constant 3.000000e-01 : f32
    %149 = vector.broadcast %cst_51 : f32 to vector<8x128xf32>
    %150 = arith.addf %149, %148 : vector<8x128xf32>
    %cst_52 = arith.constant 0.00999999977 : f32
    %151 = vector.broadcast %cst_52 : f32 to vector<8x128xf32>
    %152 = arith.mulf %151, %123 : vector<8x128xf32>
    %cst_53 = arith.constant -3.100000e-01 : f32
    %153 = vector.broadcast %cst_53 : f32 to vector<8x128xf32>
    %154 = arith.addf %153, %152 : vector<8x128xf32>
    %cst_54 = arith.constant -2.500000e-03 : f32
    %155 = vector.broadcast %cst_54 : f32 to vector<8x128xf32>
    %156 = arith.mulf %155, %123 : vector<8x128xf32>
    %157 = arith.mulf %127, %154 : vector<8x128xf32>
    %158 = arith.addf %150, %157 : vector<8x128xf32>
    %159 = arith.mulf %128, %156 : vector<8x128xf32>
    %160 = arith.addf %158, %159 : vector<8x128xf32>
    %161 = math.absf %160 : vector<8x128xf32>
    %c127_i32_55 = arith.constant 127 : i32
    %162 = tpu.dynamic_rotate %146 by %c127_i32_55 dim 1 : vector<8x128xf32>, i32 -> vector<8x128xf32>
    %c127_i32_56 = arith.constant 127 : i32
    %163 = tpu.dynamic_rotate %161 by %c127_i32_56 dim 1 : vector<8x128xf32>, i32 -> vector<8x128xf32>
    %164 = arith.addf %146, %162 : vector<8x128xf32>
    %165 = arith.maximumf %161, %163 : vector<8x128xf32>
    %166 = arith.subf %129, %123 : vector<8x128xf32>
    %167 = arith.mulf %165, %166 : vector<8x128xf32>
    %168 = arith.subf %164, %167 : vector<8x128xf32>
    %c1_i32_57 = arith.constant 1 : i32
    %169 = tpu.dynamic_rotate %168 by %c1_i32_57 dim 1 : vector<8x128xf32>, i32 -> vector<8x128xf32>
    %c127_i32_58 = arith.constant 127 : i32
    %170 = tpu.dynamic_rotate %168 by %c127_i32_58 dim 1 : vector<8x128xf32>, i32 -> vector<8x128xf32>
    %c2_i32_59 = arith.constant 2 : i32
    %171 = tpu.dynamic_rotate %168 by %c2_i32_59 dim 1 : vector<8x128xf32>, i32 -> vector<8x128xf32>
    %172 = arith.subf %168, %169 : vector<8x128xf32>
    %173 = arith.subf %123, %172 : vector<8x128xf32>
    %174 = arith.subf %170, %168 : vector<8x128xf32>
    %175 = arith.subf %129, %174 : vector<8x128xf32>
    %176 = arith.subf %169, %171 : vector<8x128xf32>
    %177 = arith.subf %130, %176 : vector<8x128xf32>
    %178 = arith.select %4, %177, %173 : vector<8x128xi1>, vector<8x128xf32>
    %179 = arith.select %2, %175, %178 : vector<8x128xi1>, vector<8x128xf32>
    %c3 = arith.constant 3 : index
    %c0_60 = arith.constant 0 : index
    %c0_61 = arith.constant 0 : index
    %180 = vector.load %arg3[%c3, %c0_60, %c0_61] : memref<8x8x128xf32, #tpu.memory_space<vmem>>, vector<1x8x128xf32>
    %181 = vector.shape_cast %180 : vector<1x8x128xf32> to vector<8x128xf32>
    %182 = vector.shape_cast %179 : vector<8x128xf32> to vector<1x8x128xf32>
    tpu.vector_store %arg3[%c3, %c0_60, %c0_61], %182 {strides = array<i32>} : memref<8x8x128xf32, #tpu.memory_space<vmem>>, vector<1x8x128xf32>,
    %183 = arith.mulf %179, %179 : vector<8x128xf32>
    %184 = arith.mulf %183, %183 : vector<8x128xf32>
    %c127_i32_62 = arith.constant 127 : i32
    %185 = tpu.dynamic_rotate %179 by %c127_i32_62 dim 1 : vector<8x128xf32>, i32 -> vector<8x128xf32>
    %c1_i32_63 = arith.constant 1 : i32
    %186 = tpu.dynamic_rotate %179 by %c1_i32_63 dim 1 : vector<8x128xf32>, i32 -> vector<8x128xf32>
    %cst_64 = arith.constant 3.000000e-01 : f32
    %187 = vector.broadcast %cst_64 : f32 to vector<8x128xf32>
    %188 = arith.mulf %187, %179 : vector<8x128xf32>
    %cst_65 = arith.constant 1.250000e-03 : f32
    %189 = vector.broadcast %cst_65 : f32 to vector<8x128xf32>
    %190 = arith.mulf %189, %183 : vector<8x128xf32>
    %191 = arith.addf %188, %190 : vector<8x128xf32>
    %cst_66 = arith.constant -0.103333332 : f32
    %192 = vector.broadcast %cst_66 : f32 to vector<8x128xf32>
    %193 = arith.mulf %192, %179 : vector<8x128xf32>
    %cst_67 = arith.constant 2.500000e-03 : f32
    %194 = vector.broadcast %cst_67 : f32 to vector<8x128xf32>
    %195 = arith.mulf %194, %183 : vector<8x128xf32>
    %196 = arith.addf %193, %195 : vector<8x128xf32>
    %cst_68 = arith.constant -4.16666677E-4 : f32
    %197 = vector.broadcast %cst_68 : f32 to vector<8x128xf32>
    %198 = arith.mulf %197, %183 : vector<8x128xf32>
    %199 = arith.mulf %183, %196 : vector<8x128xf32>
    %200 = arith.addf %191, %199 : vector<8x128xf32>
    %201 = arith.mulf %184, %198 : vector<8x128xf32>
    %202 = arith.addf %200, %201 : vector<8x128xf32>
    %cst_69 = arith.constant 2.500000e-03 : f32
    %203 = vector.broadcast %cst_69 : f32 to vector<8x128xf32>
    %204 = arith.mulf %203, %179 : vector<8x128xf32>
    %cst_70 = arith.constant 3.000000e-01 : f32
    %205 = vector.broadcast %cst_70 : f32 to vector<8x128xf32>
    %206 = arith.addf %205, %204 : vector<8x128xf32>
    %cst_71 = arith.constant 0.00999999977 : f32
    %207 = vector.broadcast %cst_71 : f32 to vector<8x128xf32>
    %208 = arith.mulf %207, %179 : vector<8x128xf32>
    %cst_72 = arith.constant -3.100000e-01 : f32
    %209 = vector.broadcast %cst_72 : f32 to vector<8x128xf32>
    %210 = arith.addf %209, %208 : vector<8x128xf32>
    %cst_73 = arith.constant -2.500000e-03 : f32
    %211 = vector.broadcast %cst_73 : f32 to vector<8x128xf32>
    %212 = arith.mulf %211, %179 : vector<8x128xf32>
    %213 = arith.mulf %183, %210 : vector<8x128xf32>
    %214 = arith.addf %206, %213 : vector<8x128xf32>
    %215 = arith.mulf %184, %212 : vector<8x128xf32>
    %216 = arith.addf %214, %215 : vector<8x128xf32>
    %217 = math.absf %216 : vector<8x128xf32>
    %c127_i32_74 = arith.constant 127 : i32
    %218 = tpu.dynamic_rotate %202 by %c127_i32_74 dim 1 : vector<8x128xf32>, i32 -> vector<8x128xf32>
    %c127_i32_75 = arith.constant 127 : i32
    %219 = tpu.dynamic_rotate %217 by %c127_i32_75 dim 1 : vector<8x128xf32>, i32 -> vector<8x128xf32>
    %220 = arith.addf %202, %218 : vector<8x128xf32>
    %221 = arith.maximumf %217, %219 : vector<8x128xf32>
    %222 = arith.subf %185, %179 : vector<8x128xf32>
    %223 = arith.mulf %221, %222 : vector<8x128xf32>
    %224 = arith.subf %220, %223 : vector<8x128xf32>
    %c1_i32_76 = arith.constant 1 : i32
    %225 = tpu.dynamic_rotate %224 by %c1_i32_76 dim 1 : vector<8x128xf32>, i32 -> vector<8x128xf32>
    %c127_i32_77 = arith.constant 127 : i32
    %226 = tpu.dynamic_rotate %224 by %c127_i32_77 dim 1 : vector<8x128xf32>, i32 -> vector<8x128xf32>
    %c2_i32_78 = arith.constant 2 : i32
    %227 = tpu.dynamic_rotate %224 by %c2_i32_78 dim 1 : vector<8x128xf32>, i32 -> vector<8x128xf32>
    %228 = arith.subf %224, %225 : vector<8x128xf32>
    %229 = arith.subf %179, %228 : vector<8x128xf32>
    %230 = arith.subf %226, %224 : vector<8x128xf32>
    %231 = arith.subf %185, %230 : vector<8x128xf32>
    %232 = arith.subf %225, %227 : vector<8x128xf32>
    %233 = arith.subf %186, %232 : vector<8x128xf32>
    %234 = arith.select %4, %233, %229 : vector<8x128xi1>, vector<8x128xf32>
    %235 = arith.select %2, %231, %234 : vector<8x128xi1>, vector<8x128xf32>
    %c4 = arith.constant 4 : index
    %c0_79 = arith.constant 0 : index
    %c0_80 = arith.constant 0 : index
    %236 = vector.load %arg3[%c4, %c0_79, %c0_80] : memref<8x8x128xf32, #tpu.memory_space<vmem>>, vector<1x8x128xf32>
    %237 = vector.shape_cast %236 : vector<1x8x128xf32> to vector<8x128xf32>
    %238 = vector.shape_cast %235 : vector<8x128xf32> to vector<1x8x128xf32>
    tpu.vector_store %arg3[%c4, %c0_79, %c0_80], %238 {strides = array<i32>} : memref<8x8x128xf32, #tpu.memory_space<vmem>>, vector<1x8x128xf32>,
    %239 = arith.mulf %235, %235 : vector<8x128xf32>
    %240 = arith.mulf %239, %239 : vector<8x128xf32>
    %c127_i32_81 = arith.constant 127 : i32
    %241 = tpu.dynamic_rotate %235 by %c127_i32_81 dim 1 : vector<8x128xf32>, i32 -> vector<8x128xf32>
    %c1_i32_82 = arith.constant 1 : i32
    %242 = tpu.dynamic_rotate %235 by %c1_i32_82 dim 1 : vector<8x128xf32>, i32 -> vector<8x128xf32>
    %cst_83 = arith.constant 3.000000e-01 : f32
    %243 = vector.broadcast %cst_83 : f32 to vector<8x128xf32>
    %244 = arith.mulf %243, %235 : vector<8x128xf32>
    %cst_84 = arith.constant 1.250000e-03 : f32
    %245 = vector.broadcast %cst_84 : f32 to vector<8x128xf32>
    %246 = arith.mulf %245, %239 : vector<8x128xf32>
    %247 = arith.addf %244, %246 : vector<8x128xf32>
    %cst_85 = arith.constant -0.103333332 : f32
    %248 = vector.broadcast %cst_85 : f32 to vector<8x128xf32>
    %249 = arith.mulf %248, %235 : vector<8x128xf32>
    %cst_86 = arith.constant 2.500000e-03 : f32
    %250 = vector.broadcast %cst_86 : f32 to vector<8x128xf32>
    %251 = arith.mulf %250, %239 : vector<8x128xf32>
    %252 = arith.addf %249, %251 : vector<8x128xf32>
    %cst_87 = arith.constant -4.16666677E-4 : f32
    %253 = vector.broadcast %cst_87 : f32 to vector<8x128xf32>
    %254 = arith.mulf %253, %239 : vector<8x128xf32>
    %255 = arith.mulf %239, %252 : vector<8x128xf32>
    %256 = arith.addf %247, %255 : vector<8x128xf32>
    %257 = arith.mulf %240, %254 : vector<8x128xf32>
    %258 = arith.addf %256, %257 : vector<8x128xf32>
    %cst_88 = arith.constant 2.500000e-03 : f32
    %259 = vector.broadcast %cst_88 : f32 to vector<8x128xf32>
    %260 = arith.mulf %259, %235 : vector<8x128xf32>
    %cst_89 = arith.constant 3.000000e-01 : f32
    %261 = vector.broadcast %cst_89 : f32 to vector<8x128xf32>
    %262 = arith.addf %261, %260 : vector<8x128xf32>
    %cst_90 = arith.constant 0.00999999977 : f32
    %263 = vector.broadcast %cst_90 : f32 to vector<8x128xf32>
    %264 = arith.mulf %263, %235 : vector<8x128xf32>
    %cst_91 = arith.constant -3.100000e-01 : f32
    %265 = vector.broadcast %cst_91 : f32 to vector<8x128xf32>
    %266 = arith.addf %265, %264 : vector<8x128xf32>
    %cst_92 = arith.constant -2.500000e-03 : f32
    %267 = vector.broadcast %cst_92 : f32 to vector<8x128xf32>
    %268 = arith.mulf %267, %235 : vector<8x128xf32>
    %269 = arith.mulf %239, %266 : vector<8x128xf32>
    %270 = arith.addf %262, %269 : vector<8x128xf32>
    %271 = arith.mulf %240, %268 : vector<8x128xf32>
    %272 = arith.addf %270, %271 : vector<8x128xf32>
    %273 = math.absf %272 : vector<8x128xf32>
    %c127_i32_93 = arith.constant 127 : i32
    %274 = tpu.dynamic_rotate %258 by %c127_i32_93 dim 1 : vector<8x128xf32>, i32 -> vector<8x128xf32>
    %c127_i32_94 = arith.constant 127 : i32
    %275 = tpu.dynamic_rotate %273 by %c127_i32_94 dim 1 : vector<8x128xf32>, i32 -> vector<8x128xf32>
    %276 = arith.addf %258, %274 : vector<8x128xf32>
    %277 = arith.maximumf %273, %275 : vector<8x128xf32>
    %278 = arith.subf %241, %235 : vector<8x128xf32>
    %279 = arith.mulf %277, %278 : vector<8x128xf32>
    %280 = arith.subf %276, %279 : vector<8x128xf32>
    %c1_i32_95 = arith.constant 1 : i32
    %281 = tpu.dynamic_rotate %280 by %c1_i32_95 dim 1 : vector<8x128xf32>, i32 -> vector<8x128xf32>
    %c127_i32_96 = arith.constant 127 : i32
    %282 = tpu.dynamic_rotate %280 by %c127_i32_96 dim 1 : vector<8x128xf32>, i32 -> vector<8x128xf32>
    %c2_i32_97 = arith.constant 2 : i32
    %283 = tpu.dynamic_rotate %280 by %c2_i32_97 dim 1 : vector<8x128xf32>, i32 -> vector<8x128xf32>
    %284 = arith.subf %280, %281 : vector<8x128xf32>
    %285 = arith.subf %235, %284 : vector<8x128xf32>
    %286 = arith.subf %282, %280 : vector<8x128xf32>
    %287 = arith.subf %241, %286 : vector<8x128xf32>
    %288 = arith.subf %281, %283 : vector<8x128xf32>
    %289 = arith.subf %242, %288 : vector<8x128xf32>
    %290 = arith.select %4, %289, %285 : vector<8x128xi1>, vector<8x128xf32>
    %291 = arith.select %2, %287, %290 : vector<8x128xi1>, vector<8x128xf32>
    %c5 = arith.constant 5 : index
    %c0_98 = arith.constant 0 : index
    %c0_99 = arith.constant 0 : index
    %292 = vector.load %arg3[%c5, %c0_98, %c0_99] : memref<8x8x128xf32, #tpu.memory_space<vmem>>, vector<1x8x128xf32>
    %293 = vector.shape_cast %292 : vector<1x8x128xf32> to vector<8x128xf32>
    %294 = vector.shape_cast %291 : vector<8x128xf32> to vector<1x8x128xf32>
    tpu.vector_store %arg3[%c5, %c0_98, %c0_99], %294 {strides = array<i32>} : memref<8x8x128xf32, #tpu.memory_space<vmem>>, vector<1x8x128xf32>,
    %295 = arith.mulf %291, %291 : vector<8x128xf32>
    %296 = arith.mulf %295, %295 : vector<8x128xf32>
    %c127_i32_100 = arith.constant 127 : i32
    %297 = tpu.dynamic_rotate %291 by %c127_i32_100 dim 1 : vector<8x128xf32>, i32 -> vector<8x128xf32>
    %c1_i32_101 = arith.constant 1 : i32
    %298 = tpu.dynamic_rotate %291 by %c1_i32_101 dim 1 : vector<8x128xf32>, i32 -> vector<8x128xf32>
    %cst_102 = arith.constant 3.000000e-01 : f32
    %299 = vector.broadcast %cst_102 : f32 to vector<8x128xf32>
    %300 = arith.mulf %299, %291 : vector<8x128xf32>
    %cst_103 = arith.constant 1.250000e-03 : f32
    %301 = vector.broadcast %cst_103 : f32 to vector<8x128xf32>
    %302 = arith.mulf %301, %295 : vector<8x128xf32>
    %303 = arith.addf %300, %302 : vector<8x128xf32>
    %cst_104 = arith.constant -0.103333332 : f32
    %304 = vector.broadcast %cst_104 : f32 to vector<8x128xf32>
    %305 = arith.mulf %304, %291 : vector<8x128xf32>
    %cst_105 = arith.constant 2.500000e-03 : f32
    %306 = vector.broadcast %cst_105 : f32 to vector<8x128xf32>
    %307 = arith.mulf %306, %295 : vector<8x128xf32>
    %308 = arith.addf %305, %307 : vector<8x128xf32>
    %cst_106 = arith.constant -4.16666677E-4 : f32
    %309 = vector.broadcast %cst_106 : f32 to vector<8x128xf32>
    %310 = arith.mulf %309, %295 : vector<8x128xf32>
    %311 = arith.mulf %295, %308 : vector<8x128xf32>
    %312 = arith.addf %303, %311 : vector<8x128xf32>
    %313 = arith.mulf %296, %310 : vector<8x128xf32>
    %314 = arith.addf %312, %313 : vector<8x128xf32>
    %cst_107 = arith.constant 2.500000e-03 : f32
    %315 = vector.broadcast %cst_107 : f32 to vector<8x128xf32>
    %316 = arith.mulf %315, %291 : vector<8x128xf32>
    %cst_108 = arith.constant 3.000000e-01 : f32
    %317 = vector.broadcast %cst_108 : f32 to vector<8x128xf32>
    %318 = arith.addf %317, %316 : vector<8x128xf32>
    %cst_109 = arith.constant 0.00999999977 : f32
    %319 = vector.broadcast %cst_109 : f32 to vector<8x128xf32>
    %320 = arith.mulf %319, %291 : vector<8x128xf32>
    %cst_110 = arith.constant -3.100000e-01 : f32
    %321 = vector.broadcast %cst_110 : f32 to vector<8x128xf32>
    %322 = arith.addf %321, %320 : vector<8x128xf32>
    %cst_111 = arith.constant -2.500000e-03 : f32
    %323 = vector.broadcast %cst_111 : f32 to vector<8x128xf32>
    %324 = arith.mulf %323, %291 : vector<8x128xf32>
    %325 = arith.mulf %295, %322 : vector<8x128xf32>
    %326 = arith.addf %318, %325 : vector<8x128xf32>
    %327 = arith.mulf %296, %324 : vector<8x128xf32>
    %328 = arith.addf %326, %327 : vector<8x128xf32>
    %329 = math.absf %328 : vector<8x128xf32>
    %c127_i32_112 = arith.constant 127 : i32
    %330 = tpu.dynamic_rotate %314 by %c127_i32_112 dim 1 : vector<8x128xf32>, i32 -> vector<8x128xf32>
    %c127_i32_113 = arith.constant 127 : i32
    %331 = tpu.dynamic_rotate %329 by %c127_i32_113 dim 1 : vector<8x128xf32>, i32 -> vector<8x128xf32>
    %332 = arith.addf %314, %330 : vector<8x128xf32>
    %333 = arith.maximumf %329, %331 : vector<8x128xf32>
    %334 = arith.subf %297, %291 : vector<8x128xf32>
    %335 = arith.mulf %333, %334 : vector<8x128xf32>
    %336 = arith.subf %332, %335 : vector<8x128xf32>
    %c1_i32_114 = arith.constant 1 : i32
    %337 = tpu.dynamic_rotate %336 by %c1_i32_114 dim 1 : vector<8x128xf32>, i32 -> vector<8x128xf32>
    %c127_i32_115 = arith.constant 127 : i32
    %338 = tpu.dynamic_rotate %336 by %c127_i32_115 dim 1 : vector<8x128xf32>, i32 -> vector<8x128xf32>
    %c2_i32_116 = arith.constant 2 : i32
    %339 = tpu.dynamic_rotate %336 by %c2_i32_116 dim 1 : vector<8x128xf32>, i32 -> vector<8x128xf32>
    %340 = arith.subf %336, %337 : vector<8x128xf32>
    %341 = arith.subf %291, %340 : vector<8x128xf32>
    %342 = arith.subf %338, %336 : vector<8x128xf32>
    %343 = arith.subf %297, %342 : vector<8x128xf32>
    %344 = arith.subf %337, %339 : vector<8x128xf32>
    %345 = arith.subf %298, %344 : vector<8x128xf32>
    %346 = arith.select %4, %345, %341 : vector<8x128xi1>, vector<8x128xf32>
    %347 = arith.select %2, %343, %346 : vector<8x128xi1>, vector<8x128xf32>
    %c6 = arith.constant 6 : index
    %c0_117 = arith.constant 0 : index
    %c0_118 = arith.constant 0 : index
    %348 = vector.load %arg3[%c6, %c0_117, %c0_118] : memref<8x8x128xf32, #tpu.memory_space<vmem>>, vector<1x8x128xf32>
    %349 = vector.shape_cast %348 : vector<1x8x128xf32> to vector<8x128xf32>
    %350 = vector.shape_cast %347 : vector<8x128xf32> to vector<1x8x128xf32>
    tpu.vector_store %arg3[%c6, %c0_117, %c0_118], %350 {strides = array<i32>} : memref<8x8x128xf32, #tpu.memory_space<vmem>>, vector<1x8x128xf32>,
    %351 = arith.mulf %347, %347 : vector<8x128xf32>
    %352 = arith.mulf %351, %351 : vector<8x128xf32>
    %c127_i32_119 = arith.constant 127 : i32
    %353 = tpu.dynamic_rotate %347 by %c127_i32_119 dim 1 : vector<8x128xf32>, i32 -> vector<8x128xf32>
    %c1_i32_120 = arith.constant 1 : i32
    %354 = tpu.dynamic_rotate %347 by %c1_i32_120 dim 1 : vector<8x128xf32>, i32 -> vector<8x128xf32>
    %cst_121 = arith.constant 3.000000e-01 : f32
    %355 = vector.broadcast %cst_121 : f32 to vector<8x128xf32>
    %356 = arith.mulf %355, %347 : vector<8x128xf32>
    %cst_122 = arith.constant 1.250000e-03 : f32
    %357 = vector.broadcast %cst_122 : f32 to vector<8x128xf32>
    %358 = arith.mulf %357, %351 : vector<8x128xf32>
    %359 = arith.addf %356, %358 : vector<8x128xf32>
    %cst_123 = arith.constant -0.103333332 : f32
    %360 = vector.broadcast %cst_123 : f32 to vector<8x128xf32>
    %361 = arith.mulf %360, %347 : vector<8x128xf32>
    %cst_124 = arith.constant 2.500000e-03 : f32
    %362 = vector.broadcast %cst_124 : f32 to vector<8x128xf32>
    %363 = arith.mulf %362, %351 : vector<8x128xf32>
    %364 = arith.addf %361, %363 : vector<8x128xf32>
    %cst_125 = arith.constant -4.16666677E-4 : f32
    %365 = vector.broadcast %cst_125 : f32 to vector<8x128xf32>
    %366 = arith.mulf %365, %351 : vector<8x128xf32>
    %367 = arith.mulf %351, %364 : vector<8x128xf32>
    %368 = arith.addf %359, %367 : vector<8x128xf32>
    %369 = arith.mulf %352, %366 : vector<8x128xf32>
    %370 = arith.addf %368, %369 : vector<8x128xf32>
    %cst_126 = arith.constant 2.500000e-03 : f32
    %371 = vector.broadcast %cst_126 : f32 to vector<8x128xf32>
    %372 = arith.mulf %371, %347 : vector<8x128xf32>
    %cst_127 = arith.constant 3.000000e-01 : f32
    %373 = vector.broadcast %cst_127 : f32 to vector<8x128xf32>
    %374 = arith.addf %373, %372 : vector<8x128xf32>
    %cst_128 = arith.constant 0.00999999977 : f32
    %375 = vector.broadcast %cst_128 : f32 to vector<8x128xf32>
    %376 = arith.mulf %375, %347 : vector<8x128xf32>
    %cst_129 = arith.constant -3.100000e-01 : f32
    %377 = vector.broadcast %cst_129 : f32 to vector<8x128xf32>
    %378 = arith.addf %377, %376 : vector<8x128xf32>
    %cst_130 = arith.constant -2.500000e-03 : f32
    %379 = vector.broadcast %cst_130 : f32 to vector<8x128xf32>
    %380 = arith.mulf %379, %347 : vector<8x128xf32>
    %381 = arith.mulf %351, %378 : vector<8x128xf32>
    %382 = arith.addf %374, %381 : vector<8x128xf32>
    %383 = arith.mulf %352, %380 : vector<8x128xf32>
    %384 = arith.addf %382, %383 : vector<8x128xf32>
    %385 = math.absf %384 : vector<8x128xf32>
    %c127_i32_131 = arith.constant 127 : i32
    %386 = tpu.dynamic_rotate %370 by %c127_i32_131 dim 1 : vector<8x128xf32>, i32 -> vector<8x128xf32>
    %c127_i32_132 = arith.constant 127 : i32
    %387 = tpu.dynamic_rotate %385 by %c127_i32_132 dim 1 : vector<8x128xf32>, i32 -> vector<8x128xf32>
    %388 = arith.addf %370, %386 : vector<8x128xf32>
    %389 = arith.maximumf %385, %387 : vector<8x128xf32>
    %390 = arith.subf %353, %347 : vector<8x128xf32>
    %391 = arith.mulf %389, %390 : vector<8x128xf32>
    %392 = arith.subf %388, %391 : vector<8x128xf32>
    %c1_i32_133 = arith.constant 1 : i32
    %393 = tpu.dynamic_rotate %392 by %c1_i32_133 dim 1 : vector<8x128xf32>, i32 -> vector<8x128xf32>
    %c127_i32_134 = arith.constant 127 : i32
    %394 = tpu.dynamic_rotate %392 by %c127_i32_134 dim 1 : vector<8x128xf32>, i32 -> vector<8x128xf32>
    %c2_i32_135 = arith.constant 2 : i32
    %395 = tpu.dynamic_rotate %392 by %c2_i32_135 dim 1 : vector<8x128xf32>, i32 -> vector<8x128xf32>
    %396 = arith.subf %392, %393 : vector<8x128xf32>
    %397 = arith.subf %347, %396 : vector<8x128xf32>
    %398 = arith.subf %394, %392 : vector<8x128xf32>
    %399 = arith.subf %353, %398 : vector<8x128xf32>
    %400 = arith.subf %393, %395 : vector<8x128xf32>
    %401 = arith.subf %354, %400 : vector<8x128xf32>
    %402 = arith.select %4, %401, %397 : vector<8x128xi1>, vector<8x128xf32>
    %403 = arith.select %2, %399, %402 : vector<8x128xi1>, vector<8x128xf32>
    %c7 = arith.constant 7 : index
    %c0_136 = arith.constant 0 : index
    %c0_137 = arith.constant 0 : index
    %404 = vector.load %arg3[%c7, %c0_136, %c0_137] : memref<8x8x128xf32, #tpu.memory_space<vmem>>, vector<1x8x128xf32>
    %405 = vector.shape_cast %404 : vector<1x8x128xf32> to vector<8x128xf32>
    %406 = vector.shape_cast %403 : vector<8x128xf32> to vector<1x8x128xf32>
    tpu.vector_store %arg3[%c7, %c0_136, %c0_137], %406 {strides = array<i32>} : memref<8x8x128xf32, #tpu.memory_space<vmem>>, vector<1x8x128xf32>,
    %c0_138 = arith.constant 0 : index
    %c0_139 = arith.constant 0 : index
    %407 = vector.load %arg4[%c0_138, %c0_139] : memref<8x128xf32, #tpu.memory_space<vmem>>, vector<8x128xf32>
    tpu.vector_store %arg4[%c0_138, %c0_139], %403 {strides = array<i32>} : memref<8x128xf32, #tpu.memory_space<vmem>>, vector<8x128xf32>,
    return
  }
  func.func @transform_0(%arg0: i32, %arg1: i32) -> (i32, i32) {
    %c0_i32 = arith.constant 0 : i32
    %c0_i32_0 = arith.constant 0 : i32
    return %arg0, %c0_i32 : i32, i32
  }
  func.func @transform_1(%arg0: i32, %arg1: i32) -> (i32, i32, i32) {
    %c0_i32 = arith.constant 0 : i32
    %c0_i32_0 = arith.constant 0 : i32
    return %arg1, %arg0, %c0_i32 : i32, i32, i32
  }
}

</mosaic_0001>

<bundles_post_ra>
// kernel: tpu_custom_call.1
= control target key start
LH: loop header
LB: loop body
LE: loop exit
PB: predicated region body
PF: predicated region fallthrough
CT: control target
= control target key end

     0   :  { %6 = vsyncpa [#allocation4], 0  ;;  %s626_s0 = inlined_call_operand.hbm [shape: f32[8,128], index: 0, kind: input, shape index: {}]   ;;  %s627_s1 = inlined_call_operand.hbm [shape: f32[8,8,128], index: 1, kind: output, shape index: {}]  }
   0x1   :  { %7 = vsyncpa [#allocation5], 0  ;;  %s522_s6 = smov [#allocation3]  }
   0x2   :  { %s14_s7 = sshll.u32 %s522_s6, 4  ;;  %s15_s7 = int_to_ptr.vmem [resolvable:$true] %s14_s7 }
   0x3   :  { %s486_s8 = scalar_lea.vmem %s15_s7, 128  ;;  %p491_p1 = scmp.lt.s32.totalorder %s15_s7, %s15_s7 }
   0x4   :  { %p487_p0 = scmp.ne.s32.totalorder %s15_s7, %s486_s8  ;;  %p492_p2 = scmp.lt.s32.totalorder %s486_s8, %s486_s8 }
   0x6   :  { %p493_p3 = por %p492_p2, %p491_p1 }
   0x8   :  { %p494_p4 = pnand %p493_p3, %p487_p0 }
   0xa   :  { %497 = shalt.err (!%p494_p4)
}
   0xb   :  { %17 = dma.hbm_to_vmem [thread:$0]  %s626_s0, 128, %s15_s7, [#allocation4]  }
   0xc   :  { %518 = dma.done.wait [#allocation4], 128  }
   0xd   :  { %519 = vsyncadd [#allocation4], 4294967168  ;;  %v29_v0 = vld [vmem:[#allocation3] sm:$0xff]  ;;  %s523_s11 = smov 127   ;;  %s524_s0 = smov 2   ;;  %v21_v32 = vlaneseq }
   0xe   :  { %88 = vst [vmem:[#allocation6] sm:$0xff] %v29_v0  ;;  %91 = vrot.lane.b32.xlu0 %v29_v0, %s523_s11  ;;  %v89_v1 = vmul.f32 %v29_v0, %v29_v0  ;;  %v106_v2 = vmul.f32 0.0025, %v29_v0  ;;  %v108_v3 = vmul.f32 0.01, %v29_v0  ;;  %s525_s12 = smov 1  }
   0xf   :  { %v110_v4 = vmul.f32 -0.0025, %v29_v0  ;;  %v95_v5 = vmul.f32 0.3, %v29_v0  ;;  %v98_v6 = vmul.f32 -0.10333333, %v29_v0 }
  0x10   :  { %v90_v7 = vmul.f32 %v89_v1, %v89_v1  ;;  %v107_v8 = vadd.f32 0.3, %v106_v2  ;;  %v109_v9 = vadd.f32 -0.31, %v108_v3  ;;  %v96_v10 = vmul.f32 0.00125, %v89_v1 }
  0x11   :  { %v99_v11 = vmul.f32 0.0025, %v89_v1  ;;  %v101_v12 = vmul.f32 -0.00041666668, %v89_v1  ;;  %v549_v35 = vand.u32 127, %v21_v32  ;;  %s526_s13 = smov [#allocation6]  }
  0x12   :  { %v111_v13 = vmul.f32 %v109_v9, %v89_v1  ;;  %v113_v14 = vmul.f32 %v110_v4, %v90_v7  ;;  %v97_v15 = vadd.f32 %v96_v10, %v95_v5  ;;  %s459_s14 = sshll.u32 %s526_s13, 4  ;;  %s460_s14 = int_to_ptr.vmem [resolvable:$true] %s459_s14 }
  0x13   :  { %v100_v16 = vadd.f32 %v99_v11, %v98_v6  ;;  %v104_v19 = vmul.f32 %v101_v12, %v90_v7  ;;  %vm24_vm0 = vcmp.eq.s32.totalorder %v549_v35, 127  ;;  %vm23_vm1 = vcmp.eq.s32.totalorder %v549_v35, 0  ;;  %s498_s15 = scalar_lea.vmem %s460_s14, 1024  ;;  %p503_p6 = scmp.lt.s32.totalorder %s460_s14, %s460_s14 }
  0x14   :  { %v112_v17 = vadd.f32 %v111_v13, %v107_v8  ;;  %p499_p5 = scmp.ne.s32.totalorder %s460_s14, %s498_s15  ;;  %p504_p7 = scmp.lt.s32.totalorder %s498_s15, %s498_s15 }
  0x15   :  { %v102_v18 = vmul.f32 %v100_v16, %v89_v1 }
  0x16   :  { %v114_v20 = vadd.f32 %v113_v14, %v112_v17  ;;  %p505_p8 = por %p504_p7, %p503_p6 }
  0x17   :  { %v103_v21 = vadd.f32 %v102_v18, %v97_v15 }
  0x18   :  { %v115_v22 = vand.u32 2147483647, %v114_v20  ;;  %p506_p9 = pnand %p505_p8, %p499_p5 }
  0x19   :  { %v105_v23 = vadd.f32 %v104_v19, %v103_v21 }
  0x1a   :  { %118 = vrot.lane.b32.xlu0 %v115_v22, %s523_s11 }
  0x1b   :  { %116 = vrot.lane.b32.xlu1 %v105_v23, %s523_s11 }
  0x80   :  { %v92_v24 = vpop.permute.xlu0 %91 }
  0x81   :  { %v122_v26 = vsub.f32 %v92_v24, %v29_v0 }
  0x8c   :  { %v119_v25 = vpop.permute.xlu0 %118 }
  0x8d   :  { %v121_v27 = vmax.f32 %v115_v22, %v119_v25  ;;  %v117_v28 = vpop.permute.xlu1 %116 }
  0x8e   :  { %v120_v29 = vadd.f32 %v117_v28, %v105_v23 }
  0x8f   :  { %v123_v30 = vmul.f32 %v122_v26, %v121_v27 }
  0x91   :  { %v124_v31 = vsub.f32 %v120_v29, %v123_v30 }
  0x93   :  { %129 = vrot.lane.b32.xlu0 %v124_v31, %s524_s0  ;;  %125 = vrot.lane.b32.xlu1 %v124_v31, %s525_s12 }
  0x97   :  { %93 = vrot.lane.b32.xlu0 %v29_v0, %s525_s12  ;;  %127 = vrot.lane.b32.xlu1 %v124_v31, %s523_s11 }
 0x105   :  { %v130_v33 = vpop.permute.xlu0 %129  ;;  %v126_v34 = vpop.permute.xlu1 %125 }
 0x106   :  { %v131_v36 = vsub.f32 %v124_v31, %v126_v34  ;;  %v135_v37 = vsub.f32 %v126_v34, %v130_v33 }
 0x108   :  { %v132_v40 = vsub.f32 %v29_v0, %v131_v36 }
 0x109   :  { %v94_v38 = vpop.permute.xlu0 %93  ;;  %v128_v39 = vpop.permute.xlu1 %127 }
 0x10a   :  { %v136_v41 = vsub.f32 %v94_v38, %v135_v37  ;;  %v133_v42 = vsub.f32 %v128_v39, %v124_v31 }
 0x10c   :  { %v137_v43 = vsel %vm24_vm0, %v136_v41, %v132_v40  ;;  %v134_v44 = vsub.f32 %v92_v24, %v133_v42 }
 0x10e   :  { %v138_v45 = vsel %vm23_vm1, %v134_v44, %v137_v43 }
 0x10f   :  { %140 = vst [vmem:[#allocation6 + $0x8] sm:$0xff] %v138_v45  ;;  %143 = vrot.lane.b32.xlu1 %v138_v45, %s523_s11  ;;  %v141_v46 = vmul.f32 %v138_v45, %v138_v45  ;;  %v158_v47 = vmul.f32 0.0025, %v138_v45  ;;  %v160_v48 = vmul.f32 0.01, %v138_v45 }
 0x110   :  { %v150_v52 = vmul.f32 -0.10333333, %v138_v45  ;;  %v162_v55 = vmul.f32 -0.0025, %v138_v45  ;;  %v147_v57 = vmul.f32 0.3, %v138_v45 }
 0x111   :  { %v142_v49 = vmul.f32 %v141_v46, %v141_v46  ;;  %v161_v50 = vadd.f32 -0.31, %v160_v48  ;;  %v148_v51 = vmul.f32 0.00125, %v141_v46  ;;  %v151_v53 = vmul.f32 0.0025, %v141_v46 }
 0x112   :  { %v159_v54 = vadd.f32 0.3, %v158_v47  ;;  %v153_v59 = vmul.f32 -0.00041666668, %v141_v46 }
 0x113   :  { %v163_v56 = vmul.f32 %v161_v50, %v141_v46  ;;  %v152_v58 = vadd.f32 %v151_v53, %v150_v52  ;;  %v165_v61 = vmul.f32 %v162_v55, %v142_v49  ;;  %v149_v62 = vadd.f32 %v148_v51, %v147_v57 }
 0x114   :  { %v156_v2 = vmul.f32 %v153_v59, %v142_v49 }
 0x115   :  { %v164_v60 = vadd.f32 %v163_v56, %v159_v54  ;;  %v154_v63 = vmul.f32 %v152_v58, %v141_v46 }
 0x117   :  { %v166_v0 = vadd.f32 %v165_v61, %v164_v60  ;;  %v155_v1 = vadd.f32 %v154_v63, %v149_v62 }
 0x119   :  { %v167_v3 = vand.u32 2147483647, %v166_v0  ;;  %v157_v4 = vadd.f32 %v156_v2, %v155_v1 }
 0x11b   :  { %170 = vrot.lane.b32.xlu0 %v167_v3, %s523_s11  ;;  %168 = vrot.lane.b32.xlu1 %v157_v4, %s523_s11 }
 0x181   :  { %v144_v5 = vpop.permute.xlu1 %143 }
 0x182   :  { %v174_v7 = vsub.f32 %v144_v5, %v138_v45 }
 0x18d   :  { %v171_v6 = vpop.permute.xlu0 %170  ;;  %v169_v9 = vpop.permute.xlu1 %168 }
 0x18e   :  { %v173_v8 = vmax.f32 %v167_v3, %v171_v6  ;;  %v172_v11 = vadd.f32 %v169_v9, %v157_v4 }
 0x190   :  { %v175_v10 = vmul.f32 %v174_v7, %v173_v8 }
 0x192   :  { %v176_v12 = vsub.f32 %v172_v11, %v175_v10 }
 0x194   :  { %181 = vrot.lane.b32.xlu1 %v176_v12, %s524_s0  ;;  %177 = vrot.lane.b32.xlu0 %v176_v12, %s525_s12 }
 0x198   :  { %145 = vrot.lane.b32.xlu1 %v138_v45, %s525_s12  ;;  %179 = vrot.lane.b32.xlu0 %v176_v12, %s523_s11 }
 0x206   :  { %v182_v13 = vpop.permute.xlu1 %181  ;;  %v178_v14 = vpop.permute.xlu0 %177 }
 0x207   :  { %v183_v15 = vsub.f32 %v176_v12, %v178_v14  ;;  %v187_v16 = vsub.f32 %v178_v14, %v182_v13 }
 0x209   :  { %v184_v19 = vsub.f32 %v138_v45, %v183_v15 }
 0x20a   :  { %v146_v17 = vpop.permute.xlu1 %145  ;;  %v180_v18 = vpop.permute.xlu0 %179 }
 0x20b   :  { %v188_v20 = vsub.f32 %v146_v17, %v187_v16  ;;  %v185_v21 = vsub.f32 %v180_v18, %v176_v12 }
 0x20d   :  { %v189_v22 = vsel %vm24_vm0, %v188_v20, %v184_v19  ;;  %v186_v23 = vsub.f32 %v144_v5, %v185_v21 }
 0x20f   :  { %v190_v24 = vsel %vm23_vm1, %v186_v23, %v189_v22 }
 0x210   :  { %192 = vst [vmem:[#allocation6 + $0x10] sm:$0xff] %v190_v24  ;;  %195 = vrot.lane.b32.xlu0 %v190_v24, %s523_s11  ;;  %v193_v25 = vmul.f32 %v190_v24, %v190_v24  ;;  %v210_v26 = vmul.f32 0.0025, %v190_v24  ;;  %v212_v27 = vmul.f32 0.01, %v190_v24 }
 0x211   :  { %v202_v31 = vmul.f32 -0.10333333, %v190_v24  ;;  %v214_v34 = vmul.f32 -0.0025, %v190_v24  ;;  %v199_v37 = vmul.f32 0.3, %v190_v24 }
 0x212   :  { %v194_v28 = vmul.f32 %v193_v25, %v193_v25  ;;  %v213_v29 = vadd.f32 -0.31, %v212_v27  ;;  %v200_v30 = vmul.f32 0.00125, %v193_v25  ;;  %v203_v32 = vmul.f32 0.0025, %v193_v25 }
 0x213   :  { %v211_v33 = vadd.f32 0.3, %v210_v26  ;;  %v205_v39 = vmul.f32 -0.00041666668, %v193_v25 }
 0x214   :  { %v215_v36 = vmul.f32 %v213_v29, %v193_v25  ;;  %v204_v38 = vadd.f32 %v203_v32, %v202_v31  ;;  %v217_v41 = vmul.f32 %v214_v34, %v194_v28  ;;  %v201_v42 = vadd.f32 %v200_v30, %v199_v37 }
 0x215   :  { %v208_v46 = vmul.f32 %v205_v39, %v194_v28 }
 0x216   :  { %v216_v40 = vadd.f32 %v215_v36, %v211_v33  ;;  %v206_v43 = vmul.f32 %v204_v38, %v193_v25 }
 0x218   :  { %v218_v44 = vadd.f32 %v217_v41, %v216_v40  ;;  %v207_v45 = vadd.f32 %v206_v43, %v201_v42 }
 0x21a   :  { %v219_v47 = vand.u32 2147483647, %v218_v44  ;;  %v209_v48 = vadd.f32 %v208_v46, %v207_v45 }
 0x21c   :  { %222 = vrot.lane.b32.xlu1 %v219_v47, %s523_s11  ;;  %220 = vrot.lane.b32.xlu0 %v209_v48, %s523_s11 }
 0x282   :  { %v196_v49 = vpop.permute.xlu0 %195 }
 0x283   :  { %v226_v51 = vsub.f32 %v196_v49, %v190_v24 }
 0x28e   :  { %v223_v50 = vpop.permute.xlu1 %222  ;;  %v221_v53 = vpop.permute.xlu0 %220 }
 0x28f   :  { %v225_v52 = vmax.f32 %v219_v47, %v223_v50  ;;  %v224_v55 = vadd.f32 %v221_v53, %v209_v48 }
 0x291   :  { %v227_v54 = vmul.f32 %v226_v51, %v225_v52 }
 0x293   :  { %v228_v56 = vsub.f32 %v224_v55, %v227_v54 }
 0x295   :  { %233 = vrot.lane.b32.xlu0 %v228_v56, %s524_s0  ;;  %229 = vrot.lane.b32.xlu1 %v228_v56, %s525_s12 }
 0x299   :  { %197 = vrot.lane.b32.xlu0 %v190_v24, %s525_s12  ;;  %231 = vrot.lane.b32.xlu1 %v228_v56, %s523_s11 }
 0x307   :  { %v234_v57 = vpop.permute.xlu0 %233  ;;  %v230_v58 = vpop.permute.xlu1 %229 }
 0x308   :  { %v235_v59 = vsub.f32 %v228_v56, %v230_v58  ;;  %v239_v60 = vsub.f32 %v230_v58, %v234_v57 }
 0x30a   :  { %v236_v63 = vsub.f32 %v190_v24, %v235_v59 }
 0x30b   :  { %v198_v61 = vpop.permute.xlu0 %197  ;;  %v232_v62 = vpop.permute.xlu1 %231 }
 0x30c   :  { %v240_v0 = vsub.f32 %v198_v61, %v239_v60  ;;  %v237_v1 = vsub.f32 %v232_v62, %v228_v56 }
 0x30e   :  { %v241_v2 = vsel %vm24_vm0, %v240_v0, %v236_v63  ;;  %v238_v3 = vsub.f32 %v196_v49, %v237_v1 }
 0x310   :  { %v242_v4 = vsel %vm23_vm1, %v238_v3, %v241_v2 }
 0x311   :  { %244 = vst [vmem:[#allocation6 + $0x18] sm:$0xff] %v242_v4  ;;  %247 = vrot.lane.b32.xlu1 %v242_v4, %s523_s11  ;;  %v245_v5 = vmul.f32 %v242_v4, %v242_v4  ;;  %v262_v6 = vmul.f32 0.0025, %v242_v4  ;;  %v264_v7 = vmul.f32 0.01, %v242_v4 }
 0x312   :  { %v254_v11 = vmul.f32 -0.10333333, %v242_v4  ;;  %v266_v14 = vmul.f32 -0.0025, %v242_v4  ;;  %v251_v16 = vmul.f32 0.3, %v242_v4 }
 0x313   :  { %v246_v8 = vmul.f32 %v245_v5, %v245_v5  ;;  %v265_v9 = vadd.f32 -0.31, %v264_v7  ;;  %v252_v10 = vmul.f32 0.00125, %v245_v5  ;;  %v255_v12 = vmul.f32 0.0025, %v245_v5 }
 0x314   :  { %v263_v13 = vadd.f32 0.3, %v262_v6  ;;  %v257_v18 = vmul.f32 -0.00041666668, %v245_v5 }
 0x315   :  { %v267_v15 = vmul.f32 %v265_v9, %v245_v5  ;;  %v256_v17 = vadd.f32 %v255_v12, %v254_v11  ;;  %v269_v20 = vmul.f32 %v266_v14, %v246_v8  ;;  %v253_v21 = vadd.f32 %v252_v10, %v251_v16 }
 0x316   :  { %v260_v25 = vmul.f32 %v257_v18, %v246_v8 }
 0x317   :  { %v268_v19 = vadd.f32 %v267_v15, %v263_v13  ;;  %v258_v22 = vmul.f32 %v256_v17, %v245_v5 }
 0x319   :  { %v270_v23 = vadd.f32 %v269_v20, %v268_v19  ;;  %v259_v24 = vadd.f32 %v258_v22, %v253_v21 }
 0x31b   :  { %v271_v26 = vand.u32 2147483647, %v270_v23  ;;  %v261_v27 = vadd.f32 %v260_v25, %v259_v24 }
 0x31d   :  { %274 = vrot.lane.b32.xlu0 %v271_v26, %s523_s11  ;;  %272 = vrot.lane.b32.xlu1 %v261_v27, %s523_s11 }
 0x383   :  { %v248_v28 = vpop.permute.xlu1 %247 }
 0x384   :  { %v278_v30 = vsub.f32 %v248_v28, %v242_v4 }
 0x38f   :  { %v275_v29 = vpop.permute.xlu0 %274  ;;  %v273_v32 = vpop.permute.xlu1 %272 }
 0x390   :  { %v277_v31 = vmax.f32 %v271_v26, %v275_v29  ;;  %v276_v34 = vadd.f32 %v273_v32, %v261_v27 }
 0x392   :  { %v279_v33 = vmul.f32 %v278_v30, %v277_v31 }
 0x394   :  { %v280_v36 = vsub.f32 %v276_v34, %v279_v33 }
 0x396   :  { %285 = vrot.lane.b32.xlu1 %v280_v36, %s524_s0  ;;  %281 = vrot.lane.b32.xlu0 %v280_v36, %s525_s12 }
 0x39a   :  { %249 = vrot.lane.b32.xlu1 %v242_v4, %s525_s12  ;;  %283 = vrot.lane.b32.xlu0 %v280_v36, %s523_s11 }
 0x408   :  { %v286_v37 = vpop.permute.xlu1 %285  ;;  %v282_v38 = vpop.permute.xlu0 %281 }
 0x409   :  { %v287_v39 = vsub.f32 %v280_v36, %v282_v38  ;;  %v291_v40 = vsub.f32 %v282_v38, %v286_v37 }
 0x40b   :  { %v288_v43 = vsub.f32 %v242_v4, %v287_v39 }
 0x40c   :  { %v250_v41 = vpop.permute.xlu1 %249  ;;  %v284_v42 = vpop.permute.xlu0 %283 }
 0x40d   :  { %v292_v44 = vsub.f32 %v250_v41, %v291_v40  ;;  %v289_v45 = vsub.f32 %v284_v42, %v280_v36 }
 0x40f   :  { %v293_v46 = vsel %vm24_vm0, %v292_v44, %v288_v43  ;;  %v290_v47 = vsub.f32 %v248_v28, %v289_v45 }
 0x411   :  { %v294_v48 = vsel %vm23_vm1, %v290_v47, %v293_v46 }
 0x412   :  { %296 = vst [vmem:[#allocation6 + $0x20] sm:$0xff] %v294_v48  ;;  %299 = vrot.lane.b32.xlu0 %v294_v48, %s523_s11  ;;  %v297_v49 = vmul.f32 %v294_v48, %v294_v48  ;;  %v314_v50 = vmul.f32 0.0025, %v294_v48  ;;  %v316_v51 = vmul.f32 0.01, %v294_v48 }
 0x413   :  { %v306_v55 = vmul.f32 -0.10333333, %v294_v48  ;;  %v318_v58 = vmul.f32 -0.0025, %v294_v48  ;;  %v303_v60 = vmul.f32 0.3, %v294_v48 }
 0x414   :  { %v298_v52 = vmul.f32 %v297_v49, %v297_v49  ;;  %v317_v53 = vadd.f32 -0.31, %v316_v51  ;;  %v304_v54 = vmul.f32 0.00125, %v297_v49  ;;  %v307_v56 = vmul.f32 0.0025, %v297_v49 }
 0x415   :  { %v315_v57 = vadd.f32 0.3, %v314_v50  ;;  %v309_v62 = vmul.f32 -0.00041666668, %v297_v49 }
 0x416   :  { %v319_v59 = vmul.f32 %v317_v53, %v297_v49  ;;  %v308_v61 = vadd.f32 %v307_v56, %v306_v55  ;;  %v321_v0 = vmul.f32 %v318_v58, %v298_v52  ;;  %v305_v1 = vadd.f32 %v304_v54, %v303_v60 }
 0x417   :  { %v312_v5 = vmul.f32 %v309_v62, %v298_v52 }
 0x418   :  { %v320_v63 = vadd.f32 %v319_v59, %v315_v57  ;;  %v310_v2 = vmul.f32 %v308_v61, %v297_v49 }
 0x41a   :  { %v322_v3 = vadd.f32 %v321_v0, %v320_v63  ;;  %v311_v4 = vadd.f32 %v310_v2, %v305_v1 }
 0x41c   :  { %v323_v6 = vand.u32 2147483647, %v322_v3  ;;  %v313_v7 = vadd.f32 %v312_v5, %v311_v4 }
 0x41e   :  { %326 = vrot.lane.b32.xlu1 %v323_v6, %s523_s11  ;;  %324 = vrot.lane.b32.xlu0 %v313_v7, %s523_s11 }
 0x484   :  { %v300_v8 = vpop.permute.xlu0 %299 }
 0x485   :  { %v330_v10 = vsub.f32 %v300_v8, %v294_v48 }
 0x490   :  { %v327_v9 = vpop.permute.xlu1 %326  ;;  %v325_v12 = vpop.permute.xlu0 %324 }
 0x491   :  { %v329_v11 = vmax.f32 %v323_v6, %v327_v9  ;;  %v328_v14 = vadd.f32 %v325_v12, %v313_v7 }
 0x493   :  { %v331_v13 = vmul.f32 %v330_v10, %v329_v11 }
 0x495   :  { %v332_v15 = vsub.f32 %v328_v14, %v331_v13 }
 0x497   :  { %337 = vrot.lane.b32.xlu0 %v332_v15, %s524_s0  ;;  %333 = vrot.lane.b32.xlu1 %v332_v15, %s525_s12 }
 0x49b   :  { %301 = vrot.lane.b32.xlu0 %v294_v48, %s525_s12  ;;  %335 = vrot.lane.b32.xlu1 %v332_v15, %s523_s11 }
 0x509   :  { %v338_v16 = vpop.permute.xlu0 %337  ;;  %v334_v17 = vpop.permute.xlu1 %333 }
 0x50a   :  { %v339_v18 = vsub.f32 %v332_v15, %v334_v17  ;;  %v343_v19 = vsub.f32 %v334_v17, %v338_v16 }
 0x50c   :  { %v340_v22 = vsub.f32 %v294_v48, %v339_v18 }
 0x50d   :  { %v302_v20 = vpop.permute.xlu0 %301  ;;  %v336_v21 = vpop.permute.xlu1 %335 }
 0x50e   :  { %v344_v23 = vsub.f32 %v302_v20, %v343_v19  ;;  %v341_v24 = vsub.f32 %v336_v21, %v332_v15 }
 0x510   :  { %v345_v25 = vsel %vm24_vm0, %v344_v23, %v340_v22  ;;  %v342_v26 = vsub.f32 %v300_v8, %v341_v24 }
 0x512   :  { %v346_v27 = vsel %vm23_vm1, %v342_v26, %v345_v25 }
 0x513   :  { %348 = vst [vmem:[#allocation6 + $0x28] sm:$0xff] %v346_v27  ;;  %351 = vrot.lane.b32.xlu1 %v346_v27, %s523_s11  ;;  %v349_v28 = vmul.f32 %v346_v27, %v346_v27  ;;  %v366_v29 = vmul.f32 0.0025, %v346_v27  ;;  %v368_v30 = vmul.f32 0.01, %v346_v27 }
 0x514   :  { %v358_v34 = vmul.f32 -0.10333333, %v346_v27  ;;  %v370_v38 = vmul.f32 -0.0025, %v346_v27  ;;  %v355_v40 = vmul.f32 0.3, %v346_v27 }
 0x515   :  { %v350_v31 = vmul.f32 %v349_v28, %v349_v28  ;;  %v369_v32 = vadd.f32 -0.31, %v368_v30  ;;  %v356_v33 = vmul.f32 0.00125, %v349_v28  ;;  %v359_v36 = vmul.f32 0.0025, %v349_v28 }
 0x516   :  { %v367_v37 = vadd.f32 0.3, %v366_v29  ;;  %v361_v42 = vmul.f32 -0.00041666668, %v349_v28 }
 0x517   :  { %v371_v39 = vmul.f32 %v369_v32, %v349_v28  ;;  %v360_v41 = vadd.f32 %v359_v36, %v358_v34  ;;  %v373_v44 = vmul.f32 %v370_v38, %v350_v31  ;;  %v357_v45 = vadd.f32 %v356_v33, %v355_v40 }
 0x518   :  { %v364_v49 = vmul.f32 %v361_v42, %v350_v31 }
 0x519   :  { %v372_v43 = vadd.f32 %v371_v39, %v367_v37  ;;  %v362_v46 = vmul.f32 %v360_v41, %v349_v28 }
 0x51b   :  { %v374_v47 = vadd.f32 %v373_v44, %v372_v43  ;;  %v363_v48 = vadd.f32 %v362_v46, %v357_v45 }
 0x51d   :  { %v375_v50 = vand.u32 2147483647, %v374_v47  ;;  %v365_v51 = vadd.f32 %v364_v49, %v363_v48 }
 0x51f   :  { %378 = vrot.lane.b32.xlu0 %v375_v50, %s523_s11  ;;  %376 = vrot.lane.b32.xlu1 %v365_v51, %s523_s11 }
 0x585   :  { %v352_v52 = vpop.permute.xlu1 %351 }
 0x586   :  { %v382_v54 = vsub.f32 %v352_v52, %v346_v27 }
 0x591   :  { %v379_v53 = vpop.permute.xlu0 %378  ;;  %v377_v56 = vpop.permute.xlu1 %376 }
 0x592   :  { %v381_v55 = vmax.f32 %v375_v50, %v379_v53  ;;  %v380_v58 = vadd.f32 %v377_v56, %v365_v51 }
 0x594   :  { %v383_v57 = vmul.f32 %v382_v54, %v381_v55 }
 0x596   :  { %v384_v59 = vsub.f32 %v380_v58, %v383_v57 }
 0x598   :  { %389 = vrot.lane.b32.xlu1 %v384_v59, %s524_s0  ;;  %385 = vrot.lane.b32.xlu0 %v384_v59, %s525_s12 }
 0x59c   :  { %353 = vrot.lane.b32.xlu1 %v346_v27, %s525_s12  ;;  %387 = vrot.lane.b32.xlu0 %v384_v59, %s523_s11 }
 0x60a   :  { %v390_v60 = vpop.permute.xlu1 %389  ;;  %v386_v61 = vpop.permute.xlu0 %385 }
 0x60b   :  { %v391_v62 = vsub.f32 %v384_v59, %v386_v61  ;;  %v395_v63 = vsub.f32 %v386_v61, %v390_v60 }
 0x60d   :  { %v392_v2 = vsub.f32 %v346_v27, %v391_v62 }
 0x60e   :  { %v354_v0 = vpop.permute.xlu1 %353  ;;  %v388_v1 = vpop.permute.xlu0 %387 }
 0x60f   :  { %v396_v3 = vsub.f32 %v354_v0, %v395_v63  ;;  %v393_v4 = vsub.f32 %v388_v1, %v384_v59 }
 0x611   :  { %v397_v5 = vsel %vm24_vm0, %v396_v3, %v392_v2  ;;  %v394_v6 = vsub.f32 %v352_v52, %v393_v4 }
 0x613   :  { %v398_v7 = vsel %vm23_vm1, %v394_v6, %v397_v5 }
 0x614   :  { %400 = vst [vmem:[#allocation6 + $0x30] sm:$0xff] %v398_v7  ;;  %403 = vrot.lane.b32.xlu0 %v398_v7, %s523_s11  ;;  %v401_v8 = vmul.f32 %v398_v7, %v398_v7  ;;  %v418_v9 = vmul.f32 0.0025, %v398_v7  ;;  %v420_v10 = vmul.f32 0.01, %v398_v7 }
 0x615   :  { %v410_v14 = vmul.f32 -0.10333333, %v398_v7  ;;  %v422_v17 = vmul.f32 -0.0025, %v398_v7  ;;  %v407_v19 = vmul.f32 0.3, %v398_v7 }
 0x616   :  { %v402_v11 = vmul.f32 %v401_v8, %v401_v8  ;;  %v421_v12 = vadd.f32 -0.31, %v420_v10  ;;  %v408_v13 = vmul.f32 0.00125, %v401_v8  ;;  %v411_v15 = vmul.f32 0.0025, %v401_v8 }
 0x617   :  { %v419_v16 = vadd.f32 0.3, %v418_v9  ;;  %v413_v21 = vmul.f32 -0.00041666668, %v401_v8 }
 0x618   :  { %v423_v18 = vmul.f32 %v421_v12, %v401_v8  ;;  %v412_v20 = vadd.f32 %v411_v15, %v410_v14  ;;  %v425_v23 = vmul.f32 %v422_v17, %v402_v11  ;;  %v409_v24 = vadd.f32 %v408_v13, %v407_v19 }
 0x619   :  { %v416_v28 = vmul.f32 %v413_v21, %v402_v11 }
 0x61a   :  { %v424_v22 = vadd.f32 %v423_v18, %v419_v16  ;;  %v414_v25 = vmul.f32 %v412_v20, %v401_v8 }
 0x61c   :  { %v426_v26 = vadd.f32 %v425_v23, %v424_v22  ;;  %v415_v27 = vadd.f32 %v414_v25, %v409_v24 }
 0x61e   :  { %v427_v29 = vand.u32 2147483647, %v426_v26  ;;  %v417_v30 = vadd.f32 %v416_v28, %v415_v27 }
 0x620   :  { %430 = vrot.lane.b32.xlu1 %v427_v29, %s523_s11  ;;  %428 = vrot.lane.b32.xlu0 %v417_v30, %s523_s11 }
 0x686   :  { %v404_v31 = vpop.permute.xlu0 %403 }
 0x687   :  { %v434_v33 = vsub.f32 %v404_v31, %v398_v7 }
 0x692   :  { %v431_v32 = vpop.permute.xlu1 %430  ;;  %v429_v36 = vpop.permute.xlu0 %428 }
 0x693   :  { %v433_v34 = vmax.f32 %v427_v29, %v431_v32  ;;  %v432_v38 = vadd.f32 %v429_v36, %v417_v30 }
 0x695   :  { %v435_v37 = vmul.f32 %v434_v33, %v433_v34 }
 0x697   :  { %v436_v39 = vsub.f32 %v432_v38, %v435_v37 }
 0x699   :  { %441 = vrot.lane.b32.xlu0 %v436_v39, %s524_s0  ;;  %437 = vrot.lane.b32.xlu1 %v436_v39, %s525_s12 }
 0x69d   :  { %405 = vrot.lane.b32.xlu0 %v398_v7, %s525_s12  ;;  %439 = vrot.lane.b32.xlu1 %v436_v39, %s523_s11 }
 0x70b   :  { %v442_v40 = vpop.permute.xlu0 %441  ;;  %v438_v41 = vpop.permute.xlu1 %437 }
 0x70c   :  { %v443_v42 = vsub.f32 %v436_v39, %v438_v41  ;;  %v447_v43 = vsub.f32 %v438_v41, %v442_v40 }
 0x70e   :  { %v444_v46 = vsub.f32 %v398_v7, %v443_v42 }
 0x70f   :  { %v406_v44 = vpop.permute.xlu0 %405  ;;  %v440_v45 = vpop.permute.xlu1 %439 }
 0x710   :  { %v448_v47 = vsub.f32 %v406_v44, %v447_v43  ;;  %v445_v48 = vsub.f32 %v440_v45, %v436_v39 }
 0x712   :  { %v449_v49 = vsel %vm24_vm0, %v448_v47, %v444_v46  ;;  %v446_v50 = vsub.f32 %v404_v31, %v445_v48 }
 0x714   :  { %v450_v51 = vsel %vm23_vm1, %v446_v50, %v449_v49 }
 0x715   :  { %452 = vst [vmem:[#allocation6 + $0x38] sm:$0xff] %v450_v51 }
 0x716   :  { %509 = shalt.err (!%p506_p9)
}
 0x717   :  { %s527_s16 = smov 128   ;;  %s528_s17 = smov 8  }
 0x718   :  { %465 = dma.vmem_to_hbm [thread:$0]  %s460_s14, 1024, %s627_s1, [#allocation5], %s527_s16, %s527_s16, %s528_s17  }
 0x719   :  { %520 = dma.done.wait [#allocation5], 1024  }
 0x71a   :  { %521 = vsyncadd [#allocation5], 4294966272 }
 0x71b   :  { %469 = vsyncpa [#allocation4], 1 }
 0x71c   :  { %470 = vsyncpa [#allocation5], 1 }

</bundles_post_ra>
